<compile_context>
chip_gen: v5e
topology: v5e:2x2
jax: 0.10.0
libtpu: 0.0.40
codegen_flags: <defaults>
</compile_context>

<pallas_src>
import math
import functools

import jax
import jax.numpy as jnp
from jax.experimental import pallas as pl
from jax.experimental.pallas import tpu as pltpu


# rows of the packed [6, H] f32 parameter block
_LN1_G, _LN1_B, _BO, _LN2_G, _LN2_B, _B2 = range(6)


def transformer_block_kernel(x_ref, bias_ref, vec_ref, bqkv_ref, b1_ref,
                             wqkv_ref, wo_ref, w1_ref, w2_ref,
                             o_ref, *, heads, d_k):
    S, H = x_ref.shape
    bf16 = jnp.bfloat16
    f32 = jnp.float32

    x = x_ref[...]                                   # [S, H] f32

    def row(i):
        return vec_ref[i:i + 1, :]                   # [1, H] f32

    def layer_norm(v, g, b):
        mu = jnp.mean(v, axis=-1, keepdims=True)
        var = jnp.mean((v - mu) ** 2, axis=-1, keepdims=True)
        return (v - mu) * jax.lax.rsqrt(var + 1e-5) * g + b

    # ---------- input sublayer: x + MHA(LN(x)) ----------
    xn = layer_norm(x, row(_LN1_G), row(_LN1_B)).astype(bf16)

    # fused QKV projection: one [S,H]x[H,3H] matmul, one packed bias add
    qkv = jnp.dot(xn, wqkv_ref[...], preferred_element_type=f32) + bqkv_ref[...]

    scale = 1.0 / math.sqrt(d_k)
    q = qkv[:, :H] * scale          # fold 1/sqrt(d_k) into q (S*H, not heads*S*S)
    k = qkv[:, H:2 * H]
    v = qkv[:, 2 * H:]

    def split_heads(t):             # [S, H] -> [heads, S, d_k]: one reshape+transpose
        return jnp.transpose(t.astype(bf16).reshape(S, heads, d_k), (1, 0, 2))

    qh, kh, vh = split_heads(q), split_heads(k), split_heads(v)

    scores = jnp.einsum('hqd,hkd->hqk', qh, kh,
                        preferred_element_type=f32)               # [heads, S, S]
    # additive key-padding bias (0 / -1e9), precomputed in the wrapper
    scores = scores + bias_ref[...][None, :, :]                   # [1, 1, S] bcast

    m = jnp.max(scores, axis=-1, keepdims=True)
    e = jnp.exp(scores - m)
    p = e * pl.reciprocal(jnp.sum(e, axis=-1, keepdims=True), approx=True)

    ctx = jnp.einsum('hqk,hkd->hqd', p.astype(bf16), vh,
                     preferred_element_type=f32)                  # [heads, S, d_k]

    # merge heads back to [S, H]; single full-K output projection on the MXU
    ctx = jnp.transpose(ctx, (1, 0, 2)).reshape(S, H).astype(bf16)
    attn = jnp.dot(ctx, wo_ref[...], preferred_element_type=f32) + row(_BO)

    x1 = x + attn

    # ---------- output sublayer: x1 + FFN(LN(x1)) ----------
    xn2 = layer_norm(x1, row(_LN2_G), row(_LN2_B)).astype(bf16)
    h1 = jnp.dot(xn2, w1_ref[...], preferred_element_type=f32) + b1_ref[...]
    # exact GELU (matches torch.nn.GELU default)
    h1 = 0.5 * h1 * (1.0 + jax.lax.erf(h1 * (1.0 / math.sqrt(2.0))))
    ff = jnp.dot(h1.astype(bf16), w2_ref[...],
                 preferred_element_type=f32) + row(_B2)

    o_ref[...] = x1 + ff


def transformer_block(x, key_mask, params, *, heads):
    B, S, H = x.shape
    d_ff = params["w1"].shape[1]
    assert H % heads == 0
    d_k = H // heads
    bf16 = jnp.bfloat16
    f32 = jnp.float32

    # Additive key-padding bias: 0 where attended, -1e9 where padded.  [B, 1, S]
    attn_bias = ((key_mask.astype(f32) - 1.0) * 1e9).reshape(B, 1, S)

    # Pack the six H-sized 1-D params into one [6, H] f32 block.
    vecs = jnp.stack([
        params["ln1_g"], params["ln1_b"], params["bo"],
        params["ln2_g"], params["ln2_b"], params["b2"],
    ], axis=0).astype(f32)
    bqkv = jnp.concatenate(
        [params["bq"], params["bk"], params["bv"]]).reshape(1, 3 * H).astype(f32)
    b1row = params["b1"].reshape(1, d_ff).astype(f32)

    # Weights in bf16 for the MXU (accumulation stays f32 in-kernel).
    wqkv = jnp.concatenate([params["wq"], params["wk"], params["wv"]],
                           axis=1).astype(bf16)                  # [H, 3H]
    wo = params["wo"].astype(bf16)                               # [H, H]
    w1 = params["w1"].astype(bf16)                               # [H, d_ff]
    w2 = params["w2"].astype(bf16)                               # [d_ff, H]

    kernel = functools.partial(transformer_block_kernel, heads=heads, d_k=d_k)

    # Weight blocks never change across the batch grid -> single-buffer them.
    single = pl.Buffered(1)
    in_specs = [
        pl.BlockSpec((None, S, H), lambda b: (b, 0, 0)),         # x (batch-squeezed)
        pl.BlockSpec((None, 1, S), lambda b: (b, 0, 0)),         # additive key bias
        pl.BlockSpec((6, H), lambda b: (0, 0)),                  # packed 1-D params
        pl.BlockSpec((1, 3 * H), lambda b: (0, 0)),              # packed qkv bias
        pl.BlockSpec((1, d_ff), lambda b: (0, 0)),               # b1
        pl.BlockSpec((H, 3 * H), lambda b: (0, 0), pipeline_mode=single),    # wqkv
        pl.BlockSpec((H, H), lambda b: (0, 0), pipeline_mode=single),        # wo
        pl.BlockSpec((H, d_ff), lambda b: (0, 0), pipeline_mode=single),     # w1
        pl.BlockSpec((d_ff, H), lambda b: (0, 0), pipeline_mode=single),     # w2
    ]
    out_spec = pl.BlockSpec((None, S, H), lambda b: (b, 0, 0))

    # NOTE: grid=(B,) marked "parallel"; with B>=2 both v7x TensorCores get work.
    # TODO(synk): for B==1 on v7x, add a second parallel axis (query tile / head group).
    return pl.pallas_call(
        kernel,
        out_shape=jax.ShapeDtypeStruct((B, S, H), jnp.float32),
        grid=(B,),
        in_specs=in_specs,
        out_specs=out_spec,
        compiler_params=pltpu.CompilerParams(
            dimension_semantics=("parallel",)),
    )(x.astype(f32), attn_bias, vecs, bqkv, b1row, wqkv, wo, w1, w2)


def reference_transformer_block(x, attention_mask, params, *, heads):
    """Pure-JAX f32 reference matching the PyTorch forward (eval mode)."""
    B, S, H = x.shape
    d_k = H // heads

    def ln(v, g, b):
        mu = v.mean(-1, keepdims=True)
        var = ((v - mu) ** 2).mean(-1, keepdims=True)
        return (v - mu) / jnp.sqrt(var + 1e-5) * g + b

    xn = ln(x, params["ln1_g"], params["ln1_b"])
    q = xn @ params["wq"] + params["bq"]
    k = xn @ params["wk"] + params["bk"]
    v = xn @ params["wv"] + params["bv"]
    q = q.reshape(B, S, heads, d_k).transpose(0, 2, 1, 3)
    k = k.reshape(B, S, heads, d_k).transpose(0, 2, 1, 3)
    v = v.reshape(B, S, heads, d_k).transpose(0, 2, 1, 3)
    scores = (q @ k.transpose(0, 1, 3, 2)) / math.sqrt(d_k)
    scores = jnp.where(attention_mask == 0, -1e9, scores)
    p_attn = jax.nn.softmax(scores, axis=-1)
    attn = (p_attn @ v).transpose(0, 2, 1, 3).reshape(B, S, H)
    attn = attn @ params["wo"] + params["bo"]
    x1 = x + attn
    xn2 = ln(x1, params["ln2_g"], params["ln2_b"])
    h1 = xn2 @ params["w1"] + params["b1"]
    h1 = 0.5 * h1 * (1.0 + jax.lax.erf(h1 / math.sqrt(2.0)))
    ff = h1 @ params["w2"] + params["b2"]
    return x1 + ff


def make_params(key, hidden, d_ff):
    ks = jax.random.split(key, 10)
    s = 0.02
    return {
        "ln1_g": jnp.ones((hidden,), jnp.float32),
        "ln1_b": jnp.zeros((hidden,), jnp.float32),
        "wq": s * jax.random.normal(ks[0], (hidden, hidden), jnp.float32),
        "bq": s * jax.random.normal(ks[1], (hidden,), jnp.float32),
        "wk": s * jax.random.normal(ks[2], (hidden, hidden), jnp.float32),
        "bk": s * jax.random.normal(ks[3], (hidden,), jnp.float32),
        "wv": s * jax.random.normal(ks[4], (hidden, hidden), jnp.float32),
        "bv": s * jax.random.normal(ks[5], (hidden,), jnp.float32),
        "wo": s * jax.random.normal(ks[6], (hidden, hidden), jnp.float32),
        "bo": jnp.zeros((hidden,), jnp.float32),
        "ln2_g": jnp.ones((hidden,), jnp.float32),
        "ln2_b": jnp.zeros((hidden,), jnp.float32),
        "w1": s * jax.random.normal(ks[7], (hidden, d_ff), jnp.float32),
        "b1": s * jax.random.normal(ks[8], (d_ff,), jnp.float32),
        "w2": s * jax.random.normal(ks[9], (d_ff, hidden), jnp.float32),
        "b2": jnp.zeros((hidden,), jnp.float32),
    }


if __name__ == "__main__":
    # NOTE: toy sizes (H=32 -> 25% lane utilization); production H>=128 removes
    # the masked partial stores / narrow-MXU effects flagged in the perf review.
    B, S, H, heads, d_ff = 2, 8, 32, 4, 64

    key = jax.random.PRNGKey(0)
    k_x, k_p = jax.random.split(key)
    x = jax.random.normal(k_x, (B, S, H), jnp.float32)

    # padding-style mask: sequence 0 full length, sequence 1 length 5
    lengths = jnp.array([S, 5])
    key_mask = (jnp.arange(S)[None, :] < lengths[:, None]).astype(jnp.float32)   # [B, S]
    # dense [B,1,S,S] attention mask (what the PyTorch module receives), for the reference
    attention_mask = jnp.broadcast_to(key_mask[:, None, None, :], (B, 1, S, S))

    params = make_params(k_p, H, d_ff)

    out = transformer_block(x, key_mask, params, heads=heads)
    out = jax.block_until_ready(out)

    ref = reference_transformer_block(x, attention_mask, params, heads=heads)
    assert out.shape == (B, S, H)
    max_err = float(jnp.max(jnp.abs(out - ref)))
    # bf16 matmuls + approx reciprocal => slightly looser tolerance than pure f32
    assert jnp.allclose(out, ref, rtol=2e-2, atol=2e-2), max_err

    print("KERNEL_OK")
</pallas_src>

<mosaic_0001>
module attributes {stable_mosaic.version = 11 : i64} {
  func.func @transformer_block_kernel(%arg0: i32, %arg1: memref<1x8x32xf32, #tpu.memory_space<vmem>>, %arg2: memref<1x1x8xf32, #tpu.memory_space<vmem>>, %arg3: memref<6x32xf32, #tpu.memory_space<vmem>>, %arg4: memref<1x96xf32, #tpu.memory_space<vmem>>, %arg5: memref<1x64xf32, #tpu.memory_space<vmem>>, %arg6: memref<32x96xbf16, #tpu.memory_space<vmem>>, %arg7: memref<32x32xbf16, #tpu.memory_space<vmem>>, %arg8: memref<32x64xbf16, #tpu.memory_space<vmem>>, %arg9: memref<64x32xbf16, #tpu.memory_space<vmem>>, %arg10: memref<1x8x32xf32, #tpu.memory_space<vmem>>) attributes {dimension_semantics = [#tpu.dimension_semantics<parallel>], iteration_bounds = array<i64: 2>, scalar_prefetch = 0 : i64, scratch_operands = 0 : i64, tpu.core_type = #tpu.core_type<tc>, window_params = [{transform_indices = @transform_0, window_bounds = array<i64: 1, 8, 32>}, {transform_indices = @transform_1, window_bounds = array<i64: 1, 1, 8>}, {pipeline_mode = #tpu.pipeline_mode<synchronous>, transform_indices = @transform_2, window_bounds = array<i64: 6, 32>}, {pipeline_mode = #tpu.pipeline_mode<synchronous>, transform_indices = @transform_3, window_bounds = array<i64: 1, 96>}, {pipeline_mode = #tpu.pipeline_mode<synchronous>, transform_indices = @transform_4, window_bounds = array<i64: 1, 64>}, {pipeline_mode = #tpu.pipeline_mode<synchronous>, transform_indices = @transform_5, window_bounds = array<i64: 32, 96>}, {pipeline_mode = #tpu.pipeline_mode<synchronous>, transform_indices = @transform_6, window_bounds = array<i64: 32, 32>}, {pipeline_mode = #tpu.pipeline_mode<synchronous>, transform_indices = @transform_7, window_bounds = array<i64: 32, 64>}, {pipeline_mode = #tpu.pipeline_mode<synchronous>, transform_indices = @transform_8, window_bounds = array<i64: 64, 32>}, {transform_indices = @transform_9, window_bounds = array<i64: 1, 8, 32>}]} {
    %c0 = arith.constant 0 : index
    %c0_0 = arith.constant 0 : index
    %c0_1 = arith.constant 0 : index
    %0 = vector.load %arg1[%c0, %c0_0, %c0_1] : memref<1x8x32xf32, #tpu.memory_space<vmem>>, vector<1x8x32xf32>
    %1 = vector.shape_cast %0 : vector<1x8x32xf32> to vector<8x32xf32>
    %c0_2 = arith.constant 0 : index
    %c0_3 = arith.constant 0 : index
    %2 = vector.load %arg3[%c0_2, %c0_3] : memref<6x32xf32, #tpu.memory_space<vmem>>, vector<1x32xf32>
    %c1 = arith.constant 1 : index
    %c0_4 = arith.constant 0 : index
    %3 = vector.load %arg3[%c1, %c0_4] : memref<6x32xf32, #tpu.memory_space<vmem>>, vector<1x32xf32>
    %cst = arith.constant dense<0.000000e+00> : vector<8xf32>
    %4 = vector.multi_reduction <add>, %1, %cst [1] : vector<8x32xf32> to vector<8xf32>
    %5 = vector.shape_cast %4 : vector<8xf32> to vector<8x1xf32>
    %cst_5 = arith.constant 3.200000e+01 : f32
    %6 = vector.broadcast %cst_5 : f32 to vector<8x1xf32>
    %7 = arith.divf %5, %6 : vector<8x1xf32>
    %8 = vector.broadcast %7 : vector<8x1xf32> to vector<8x32xf32>
    %9 = arith.subf %1, %8 : vector<8x32xf32>
    %10 = arith.mulf %9, %9 : vector<8x32xf32>
    %cst_6 = arith.constant dense<0.000000e+00> : vector<8xf32>
    %11 = vector.multi_reduction <add>, %10, %cst_6 [1] : vector<8x32xf32> to vector<8xf32>
    %12 = vector.shape_cast %11 : vector<8xf32> to vector<8x1xf32>
    %cst_7 = arith.constant 3.200000e+01 : f32
    %13 = vector.broadcast %cst_7 : f32 to vector<8x1xf32>
    %14 = arith.divf %12, %13 : vector<8x1xf32>
    %15 = vector.broadcast %7 : vector<8x1xf32> to vector<8x32xf32>
    %16 = arith.subf %1, %15 : vector<8x32xf32>
    %cst_8 = arith.constant 9.99999974E-6 : f32
    %17 = vector.broadcast %cst_8 : f32 to vector<8x1xf32>
    %18 = arith.addf %14, %17 : vector<8x1xf32>
    %19 = math.rsqrt %18 : vector<8x1xf32>
    %20 = vector.broadcast %19 : vector<8x1xf32> to vector<8x32xf32>
    %21 = arith.mulf %16, %20 : vector<8x32xf32>
    %22 = vector.broadcast %2 : vector<1x32xf32> to vector<8x32xf32>
    %23 = arith.mulf %21, %22 : vector<8x32xf32>
    %24 = vector.broadcast %3 : vector<1x32xf32> to vector<8x32xf32>
    %25 = arith.addf %23, %24 : vector<8x32xf32>
    %26 = arith.truncf %25 : vector<8x32xf32> to vector<8x32xbf16>
    %c0_9 = arith.constant 0 : index
    %c0_10 = arith.constant 0 : index
    %27 = vector.load %arg6[%c0_9, %c0_10] : memref<32x96xbf16, #tpu.memory_space<vmem>>, vector<32x96xbf16>
    %cst_11 = arith.constant dense<0.000000e+00> : vector<8x96xf32>
    %28 = tpu.matmul %26, %27, %cst_11 {dimension_numbers = #tpu.dot_dimension_numbers<[1], [0], [0], [1], [0, 0, 1, 1], [], []>} : vector<8x32xbf16>, vector<32x96xbf16>, vector<8x96xf32> -> vector<8x96xf32>
    %c0_12 = arith.constant 0 : index
    %c0_13 = arith.constant 0 : index
    %29 = vector.load %arg4[%c0_12, %c0_13] : memref<1x96xf32, #tpu.memory_space<vmem>>, vector<1x96xf32>
    %30 = vector.broadcast %29 : vector<1x96xf32> to vector<8x96xf32>
    %31 = arith.addf %28, %30 : vector<8x96xf32>
    %32 = vector.extract_strided_slice %31 {offsets = [0, 0], sizes = [8, 32], strides = [1, 1]} : vector<8x96xf32> to vector<8x32xf32>
    %cst_14 = arith.constant 0.353553385 : f32
    %33 = vector.broadcast %cst_14 : f32 to vector<8x32xf32>
    %34 = arith.mulf %32, %33 : vector<8x32xf32>
    %35 = vector.extract_strided_slice %31 {offsets = [0, 32], sizes = [8, 32], strides = [1, 1]} : vector<8x96xf32> to vector<8x32xf32>
    %36 = vector.extract_strided_slice %31 {offsets = [0, 64], sizes = [8, 32], strides = [1, 1]} : vector<8x96xf32> to vector<8x32xf32>
    %37 = arith.truncf %34 : vector<8x32xf32> to vector<8x32xbf16>
    %38 = vector.shape_cast %37 : vector<8x32xbf16> to vector<8x4x8xbf16>
    %39 = tpu.transpose %38, [1, 0, 2] : vector<8x4x8xbf16> -> vector<4x8x8xbf16>
    %40 = arith.truncf %35 : vector<8x32xf32> to vector<8x32xbf16>
    %41 = vector.shape_cast %40 : vector<8x32xbf16> to vector<8x4x8xbf16>
    %42 = tpu.transpose %41, [1, 0, 2] : vector<8x4x8xbf16> -> vector<4x8x8xbf16>
    %43 = arith.truncf %36 : vector<8x32xf32> to vector<8x32xbf16>
    %44 = vector.shape_cast %43 : vector<8x32xbf16> to vector<8x4x8xbf16>
    %45 = tpu.transpose %44, [1, 0, 2] : vector<8x4x8xbf16> -> vector<4x8x8xbf16>
    "tpu.trace_start"() <{level = 10 : i32, message = "hqd,hkd->hqk"}> : () -> ()
    %cst_15 = arith.constant dense<0.000000e+00> : vector<4x8x8xf32>
    %46 = tpu.matmul %39, %42, %cst_15 {dimension_numbers = #tpu.dot_dimension_numbers<[2], [2], [1], [1], [0, 0, 0, 1, 1, 1], [0], [0]>} : vector<4x8x8xbf16>, vector<4x8x8xbf16>, vector<4x8x8xf32> -> vector<4x8x8xf32>
    "tpu.trace_stop"() : () -> ()
    %c0_16 = arith.constant 0 : index
    %c0_17 = arith.constant 0 : index
    %c0_18 = arith.constant 0 : index
    %47 = vector.load %arg2[%c0_16, %c0_17, %c0_18] : memref<1x1x8xf32, #tpu.memory_space<vmem>>, vector<1x1x8xf32>
    %48 = vector.shape_cast %47 : vector<1x1x8xf32> to vector<1x8xf32>
    %49 = vector.shape_cast %48 : vector<1x8xf32> to vector<1x1x8xf32>
    %50 = vector.broadcast %49 : vector<1x1x8xf32> to vector<4x8x8xf32>
    %51 = arith.addf %46, %50 : vector<4x8x8xf32>
    %cst_19 = arith.constant dense<0xFF800000> : vector<4x8xf32>
    %52 = vector.multi_reduction <maximumf>, %51, %cst_19 [2] : vector<4x8x8xf32> to vector<4x8xf32>
    %53 = vector.shape_cast %52 : vector<4x8xf32> to vector<4x8x1xf32>
    %54 = vector.broadcast %53 : vector<4x8x1xf32> to vector<4x8x8xf32>
    %55 = arith.subf %51, %54 : vector<4x8x8xf32>
    %56 = math.exp %55 : vector<4x8x8xf32>
    %cst_20 = arith.constant dense<0.000000e+00> : vector<4x8xf32>
    %57 = vector.multi_reduction <add>, %56, %cst_20 [2] : vector<4x8x8xf32> to vector<4x8xf32>
    %58 = vector.shape_cast %57 : vector<4x8xf32> to vector<4x8x1xf32>
    %59 = tpu.reciprocal %58 {approx = true} : vector<4x8x1xf32> -> vector<4x8x1xf32>
    %60 = vector.broadcast %59 : vector<4x8x1xf32> to vector<4x8x8xf32>
    %61 = arith.mulf %56, %60 : vector<4x8x8xf32>
    %62 = arith.truncf %61 : vector<4x8x8xf32> to vector<4x8x8xbf16>
    "tpu.trace_start"() <{level = 10 : i32, message = "hqk,hkd->hqd"}> : () -> ()
    %cst_21 = arith.constant dense<0.000000e+00> : vector<4x8x8xf32>
    %63 = tpu.matmul %62, %45, %cst_21 {dimension_numbers = #tpu.dot_dimension_numbers<[2], [1], [1], [2], [0, 0, 0, 1, 1, 2], [0], [0]>} : vector<4x8x8xbf16>, vector<4x8x8xbf16>, vector<4x8x8xf32> -> vector<4x8x8xf32>
    "tpu.trace_stop"() : () -> ()
    %64 = tpu.transpose %63, [1, 0, 2] : vector<4x8x8xf32> -> vector<8x4x8xf32>
    %65 = vector.shape_cast %64 : vector<8x4x8xf32> to vector<8x32xf32>
    %66 = arith.truncf %65 : vector<8x32xf32> to vector<8x32xbf16>
    %c0_22 = arith.constant 0 : index
    %c0_23 = arith.constant 0 : index
    %67 = vector.load %arg7[%c0_22, %c0_23] : memref<32x32xbf16, #tpu.memory_space<vmem>>, vector<32x32xbf16>
    %cst_24 = arith.constant dense<0.000000e+00> : vector<8x32xf32>
    %68 = tpu.matmul %66, %67, %cst_24 {dimension_numbers = #tpu.dot_dimension_numbers<[1], [0], [0], [1], [0, 0, 1, 1], [], []>} : vector<8x32xbf16>, vector<32x32xbf16>, vector<8x32xf32> -> vector<8x32xf32>
    %c2 = arith.constant 2 : index
    %c0_25 = arith.constant 0 : index
    %69 = vector.load %arg3[%c2, %c0_25] : memref<6x32xf32, #tpu.memory_space<vmem>>, vector<1x32xf32>
    %70 = vector.broadcast %69 : vector<1x32xf32> to vector<8x32xf32>
    %71 = arith.addf %68, %70 : vector<8x32xf32>
    %72 = arith.addf %1, %71 : vector<8x32xf32>
    %c3 = arith.constant 3 : index
    %c0_26 = arith.constant 0 : index
    %73 = vector.load %arg3[%c3, %c0_26] : memref<6x32xf32, #tpu.memory_space<vmem>>, vector<1x32xf32>
    %c4 = arith.constant 4 : index
    %c0_27 = arith.constant 0 : index
    %74 = vector.load %arg3[%c4, %c0_27] : memref<6x32xf32, #tpu.memory_space<vmem>>, vector<1x32xf32>
    %cst_28 = arith.constant dense<0.000000e+00> : vector<8xf32>
    %75 = vector.multi_reduction <add>, %72, %cst_28 [1] : vector<8x32xf32> to vector<8xf32>
    %76 = vector.shape_cast %75 : vector<8xf32> to vector<8x1xf32>
    %cst_29 = arith.constant 3.200000e+01 : f32
    %77 = vector.broadcast %cst_29 : f32 to vector<8x1xf32>
    %78 = arith.divf %76, %77 : vector<8x1xf32>
    %79 = vector.broadcast %78 : vector<8x1xf32> to vector<8x32xf32>
    %80 = arith.subf %72, %79 : vector<8x32xf32>
    %81 = arith.mulf %80, %80 : vector<8x32xf32>
    %cst_30 = arith.constant dense<0.000000e+00> : vector<8xf32>
    %82 = vector.multi_reduction <add>, %81, %cst_30 [1] : vector<8x32xf32> to vector<8xf32>
    %83 = vector.shape_cast %82 : vector<8xf32> to vector<8x1xf32>
    %cst_31 = arith.constant 3.200000e+01 : f32
    %84 = vector.broadcast %cst_31 : f32 to vector<8x1xf32>
    %85 = arith.divf %83, %84 : vector<8x1xf32>
    %86 = vector.broadcast %78 : vector<8x1xf32> to vector<8x32xf32>
    %87 = arith.subf %72, %86 : vector<8x32xf32>
    %cst_32 = arith.constant 9.99999974E-6 : f32
    %88 = vector.broadcast %cst_32 : f32 to vector<8x1xf32>
    %89 = arith.addf %85, %88 : vector<8x1xf32>
    %90 = math.rsqrt %89 : vector<8x1xf32>
    %91 = vector.broadcast %90 : vector<8x1xf32> to vector<8x32xf32>
    %92 = arith.mulf %87, %91 : vector<8x32xf32>
    %93 = vector.broadcast %73 : vector<1x32xf32> to vector<8x32xf32>
    %94 = arith.mulf %92, %93 : vector<8x32xf32>
    %95 = vector.broadcast %74 : vector<1x32xf32> to vector<8x32xf32>
    %96 = arith.addf %94, %95 : vector<8x32xf32>
    %97 = arith.truncf %96 : vector<8x32xf32> to vector<8x32xbf16>
    %c0_33 = arith.constant 0 : index
    %c0_34 = arith.constant 0 : index
    %98 = vector.load %arg8[%c0_33, %c0_34] : memref<32x64xbf16, #tpu.memory_space<vmem>>, vector<32x64xbf16>
    %cst_35 = arith.constant dense<0.000000e+00> : vector<8x64xf32>
    %99 = tpu.matmul %97, %98, %cst_35 {dimension_numbers = #tpu.dot_dimension_numbers<[1], [0], [0], [1], [0, 0, 1, 1], [], []>} : vector<8x32xbf16>, vector<32x64xbf16>, vector<8x64xf32> -> vector<8x64xf32>
    %c0_36 = arith.constant 0 : index
    %c0_37 = arith.constant 0 : index
    %100 = vector.load %arg5[%c0_36, %c0_37] : memref<1x64xf32, #tpu.memory_space<vmem>>, vector<1x64xf32>
    %101 = vector.broadcast %100 : vector<1x64xf32> to vector<8x64xf32>
    %102 = arith.addf %99, %101 : vector<8x64xf32>
    %cst_38 = arith.constant 5.000000e-01 : f32
    %103 = vector.broadcast %cst_38 : f32 to vector<8x64xf32>
    %104 = arith.mulf %103, %102 : vector<8x64xf32>
    %cst_39 = arith.constant 0.707106769 : f32
    %105 = vector.broadcast %cst_39 : f32 to vector<8x64xf32>
    %106 = arith.mulf %102, %105 : vector<8x64xf32>
    %107 = math.erf %106 : vector<8x64xf32>
    %cst_40 = arith.constant 1.000000e+00 : f32
    %108 = vector.broadcast %cst_40 : f32 to vector<8x64xf32>
    %109 = arith.addf %108, %107 : vector<8x64xf32>
    %110 = arith.mulf %104, %109 : vector<8x64xf32>
    %111 = arith.truncf %110 : vector<8x64xf32> to vector<8x64xbf16>
    %c0_41 = arith.constant 0 : index
    %c0_42 = arith.constant 0 : index
    %112 = vector.load %arg9[%c0_41, %c0_42] : memref<64x32xbf16, #tpu.memory_space<vmem>>, vector<64x32xbf16>
    %cst_43 = arith.constant dense<0.000000e+00> : vector<8x32xf32>
    %113 = tpu.matmul %111, %112, %cst_43 {dimension_numbers = #tpu.dot_dimension_numbers<[1], [0], [0], [1], [0, 0, 1, 1], [], []>} : vector<8x64xbf16>, vector<64x32xbf16>, vector<8x32xf32> -> vector<8x32xf32>
    %c5 = arith.constant 5 : index
    %c0_44 = arith.constant 0 : index
    %114 = vector.load %arg3[%c5, %c0_44] : memref<6x32xf32, #tpu.memory_space<vmem>>, vector<1x32xf32>
    %115 = vector.broadcast %114 : vector<1x32xf32> to vector<8x32xf32>
    %116 = arith.addf %113, %115 : vector<8x32xf32>
    %117 = arith.addf %72, %116 : vector<8x32xf32>
    %c0_45 = arith.constant 0 : index
    %c0_46 = arith.constant 0 : index
    %c0_47 = arith.constant 0 : index
    %118 = vector.load %arg10[%c0_45, %c0_46, %c0_47] : memref<1x8x32xf32, #tpu.memory_space<vmem>>, vector<1x8x32xf32>
    %119 = vector.shape_cast %118 : vector<1x8x32xf32> to vector<8x32xf32>
    %120 = vector.shape_cast %117 : vector<8x32xf32> to vector<1x8x32xf32>
    tpu.vector_store %arg10[%c0_45, %c0_46, %c0_47], %120 {strides = array<i32>} : memref<1x8x32xf32, #tpu.memory_space<vmem>>, vector<1x8x32xf32>,
    return
  }
  func.func @transform_0(%arg0: i32) -> (i32, i32, i32) {
    %c0_i32 = arith.constant 0 : i32
    %c0_i32_0 = arith.constant 0 : i32
    %c0_i32_1 = arith.constant 0 : i32
    return %arg0, %c0_i32, %c0_i32_0 : i32, i32, i32
  }
  func.func @transform_1(%arg0: i32) -> (i32, i32, i32) {
    %c0_i32 = arith.constant 0 : i32
    %c0_i32_0 = arith.constant 0 : i32
    %c0_i32_1 = arith.constant 0 : i32
    return %arg0, %c0_i32, %c0_i32_0 : i32, i32, i32
  }
  func.func @transform_2(%arg0: i32) -> (i32, i32) {
    %c0_i32 = arith.constant 0 : i32
    %c0_i32_0 = arith.constant 0 : i32
    %c0_i32_1 = arith.constant 0 : i32
    return %c0_i32, %c0_i32_0 : i32, i32
  }
  func.func @transform_3(%arg0: i32) -> (i32, i32) {
    %c0_i32 = arith.constant 0 : i32
    %c0_i32_0 = arith.constant 0 : i32
    %c0_i32_1 = arith.constant 0 : i32
    return %c0_i32, %c0_i32_0 : i32, i32
  }
  func.func @transform_4(%arg0: i32) -> (i32, i32) {
    %c0_i32 = arith.constant 0 : i32
    %c0_i32_0 = arith.constant 0 : i32
    %c0_i32_1 = arith.constant 0 : i32
    return %c0_i32, %c0_i32_0 : i32, i32
  }
  func.func @transform_5(%arg0: i32) -> (i32, i32) {
    %c0_i32 = arith.constant 0 : i32
    %c0_i32_0 = arith.constant 0 : i32
    %c0_i32_1 = arith.constant 0 : i32
    return %c0_i32, %c0_i32_0 : i32, i32
  }
  func.func @transform_6(%arg0: i32) -> (i32, i32) {
    %c0_i32 = arith.constant 0 : i32
    %c0_i32_0 = arith.constant 0 : i32
    %c0_i32_1 = arith.constant 0 : i32
    return %c0_i32, %c0_i32_0 : i32, i32
  }
  func.func @transform_7(%arg0: i32) -> (i32, i32) {
    %c0_i32 = arith.constant 0 : i32
    %c0_i32_0 = arith.constant 0 : i32
    %c0_i32_1 = arith.constant 0 : i32
    return %c0_i32, %c0_i32_0 : i32, i32
  }
  func.func @transform_8(%arg0: i32) -> (i32, i32) {
    %c0_i32 = arith.constant 0 : i32
    %c0_i32_0 = arith.constant 0 : i32
    %c0_i32_1 = arith.constant 0 : i32
    return %c0_i32, %c0_i32_0 : i32, i32
  }
  func.func @transform_9(%arg0: i32) -> (i32, i32, i32) {
    %c0_i32 = arith.constant 0 : i32
    %c0_i32_0 = arith.constant 0 : i32
    %c0_i32_1 = arith.constant 0 : i32
    return %arg0, %c0_i32, %c0_i32_0 : i32, i32, i32
  }
}

</mosaic_0001>

<bundles_post_ra>
// kernel: tpu_custom_call.1
= control target key start
LH: loop header
LB: loop body
LE: loop exit
PB: predicated region body
PF: predicated region fallthrough
CT: control target
= control target key end

     0   :  { %s2302_s0 = inlined_call_operand.vmem [shape: f32[2,8,32], index: 0, kind: input, shape index: {}]   ;;  %s2303_s1 = inlined_call_operand.hbm [shape: f32[2,1,8], index: 1, kind: input, shape index: {}]   ;;  %s2304_s2 = inlined_call_operand.hbm [shape: f32[6,32], index: 2, kind: input, shape index: {}]   ;;  %s2305_s3 = inlined_call_operand.vmem [shape: f32[1,96], index: 3, kind: input, shape index: {}]   ;;  %s2306_s4 = inlined_call_operand.vmem [shape: f32[1,64], index: 4, kind: input, shape index: {}]   ;;  %s2307_s5 = inlined_call_operand.vmem [shape: bf16[32,96], index: 5, kind: input, shape index: {}]   ;;  %s2308_s6 = inlined_call_operand.vmem [shape: bf16[32,32], index: 6, kind: input, shape index: {}]   ;;  %s2309_s7 = inlined_call_operand.hbm [shape: bf16[32,64], index: 7, kind: input, shape index: {}]   ;;  %s2310_s8 = inlined_call_operand.vmem [shape: bf16[64,32], index: 8, kind: input, shape index: {}]   ;;  %s2311_s9 = inlined_call_operand.hbm [shape: f32[2,8,32], index: 9, kind: output, shape index: {}]  }
   0x1   :  { %2312 = sst [smem:[#allocation12_spill]] %s2304_s2 }
   0x2   :  { %2313 = sst [smem:[#allocation13_spill]] %s2309_s7 }
   0x3   :  { %14 = vsyncpa [#allocation3], 0 }
   0x4   :  { %16 = vsyncpa [#allocation3 + $0x1], 0 }
   0x5   :  { %17 = vsyncpa [#allocation6], 0 }
   0x6   :  { %18 = vsyncpa [#allocation4], 0 }
   0x7   :  { %20 = vsyncpa [#allocation4 + $0x1], 0  ;;  %s1908_s30 = smov 0   ;;  %s1910_s10 = smov 0  }
   0x8   :  { %s1912_s11 = smov 0   ;;  %s1914_s12 = smov 0  }
   0x9 LB: > { %s1929_s13 = sadd.s32 4294967295, %s1841_s12   ;;  %s1491_s14 = sadd.s32 4294967294, %s1841_s12   ;;  %s1841_s12 = sphi %s1914_s12, %s2325_s12   ;;  %s1837_s11 = sphi %s1912_s11, %s2324_s11   ;;  %s1833_s10 = sphi %s1910_s10, %s2323_s10   ;;  %s1829_s30 = sphi %s1908_s30, %s2322_s30  }
   0xa   : > { %p72_p0 = scmp.ne.s32.totalorder %s1833_s10, %s1829_s30  ;;  %p73_p1 = scmp.eq.s32.totalorder %s1929_s13, 0 }
   0xb   : > { %p243_p2 = scmp.eq.s32.totalorder %s1929_s13, 1  ;;  %p249_p3 = scmp.eq.s32.totalorder %s1491_s14, 1 }
   0xc   : > { %p1938_p4 = por %p73_p1, %p72_p0  ;;  %p1492_p5 = scmp.ge.s32.totalorder %s1841_s12, 1 }
   0xd   : > { %p1943_p6 = por %p249_p3, %p72_p0  ;;  %p256_p7 = scmp.lt.s32.totalorder %s1841_s12, 3 }
   0xe   : > { %s2316_s2 = sld [smem:[#allocation12_spill]]  ;;  %s1843_s21 = smov [#allocation5]  }
   0xf   : > { %p1951_p8 = pnand %p1492_p5, %p256_p7  ;;  %s270_s22 = sshll.u32 %s1843_s21, 4  ;;  %s271_s22 = int_to_ptr.vmem [resolvable:$true] %s270_s22 }
  0x10   : > { %s2318_s7 = sld [smem:[#allocation13_spill]]  ;;  %s1844_s26 = smov [#allocation7]  }
  0x11   : > { %p1580_p10 = pneg %p1951_p8  ;;  %s293_s27 = sshll.u32 %s1844_s26, 4  ;;  %s294_s27 = int_to_ptr.vmem [resolvable:$true] %s293_s27 }
  0x12   : > { %s1845_s28 = smov 64   ;;  %s1846_s29 = smov 4  }
  0x13   : > { %p1581_p11 = pnand %p1580_p10, %p73_p1  ;;  %s1964_s14 = sadd.s32 1, %s1841_s12  }
  0x14   : > { %s268_s19 = sshll.u32 %s2316_s2, 4  ;;  %s56_s17 = ssub.s32 %s1841_s12, %s1964_s14  ;;  %s269_s19 = int_to_ptr.hbm [resolvable:$true] %s268_s19 }
  0x15   : > { %1583 = dma.hbm_to_vmem [thread:$0]  (!%p1581_p11), %s269_s19, 128, %s271_s22, [#allocation6]  }
  0x16   : > { %s291_s25 = sshll.u32 %s2318_s7, 4  ;;  %p57_p12 = scmp.eq.s32.totalorder %s56_s17, 0  ;;  %s292_s25 = int_to_ptr.hbm [resolvable:$true] %s291_s25 }
  0x17   : > { %1586 = dma.hbm_to_vmem [thread:$0]  (!%p1581_p11), %s292_s25, 256, %s294_s27, [#allocation6], %s1845_s28, %s1845_s28, %s1846_s29  }
  0x18   : > { %s59_s18 = sadd.s32 1, %s1837_s11  ;;  %p66_p13 = scmp.ne.s32.totalorder %s1837_s11, %s1833_s10 }
  0x19   : > { %p67_p0 = scmp.eq.s32.totalorder %s1841_s12, 0  ;;  %p1597_p7 = scmp.lt.s32.totalorder %s1841_s12, 2 }
  0x1a   : > { %s1973_s21 = scalar_select %p57_p12, %s1837_s11, %s59_s18  }
  0x1b   : > { %p68_p3 = por %p67_p0, %p66_p13  ;;  %p1977_p5 = por %p243_p2, %p66_p13 }
  0x1c   : > { %s317_s19 = sand.u32 1, %s1837_s11   ;;  %s323_s25 = scalar_lea.hbm %s2303_s1, %s1841_s12 }
  0x1d   : > { %s320_s26 = scalar_lea.vmem [#allocation2], %s317_s19  ;;  %s325_s28 = sshll.u32 %s323_s25, 4  ;;  %s326_s28 = int_to_ptr.hbm [resolvable:$true] %s325_s28 }
  0x1e   : > { %s327_s27 = sshll.u32 %s320_s26, 4  ;;  %p1987_p10 = pnand %p1597_p7, %p68_p3  ;;  %s328_s27 = int_to_ptr.vmem [resolvable:$true] %s327_s27 }
  0x1f   : > { %s318_s17 = scalar_lea.sflag [#allocation3], %s317_s19  ;;  %s1741_s18 = sshra.s32 %s326_s28, 4  ;;  %s1742_s18 = int_to_ptr.hbm [resolvable:$true] %s1741_s18 }
  0x20   : > { %s1743_s2 = scalar_lea.hbm %s1742_s18, 1  ;;  %p1745_p11 = pneg %p1987_p10 }
  0x21   : > { %p1744_p2 = scmp.ne.s32.totalorder %s1742_s18, %s1743_s2  ;;  %s1748_s25 = scalar_lea.hbm %s2303_s1, 2 }
  0x22   : > { %p1749_p0 = scmp.lt.s32.totalorder %s1742_s18, %s2303_s1  ;;  %p1750_p3 = scmp.lt.s32.totalorder %s1748_s25, %s1743_s2 }
  0x23   : > { %p1746_p12 = pnand %p1745_p11, %p1744_p2 }
  0x24   : > { %p1751_p7 = por %p1750_p3, %p1749_p0 }
  0x25   : > { %p1747_p13 = pneg %p1746_p12 }
  0x27   : > { %p1752_p9 = pnand %p1751_p7, %p1747_p13 }
  0x29   : > { %1755 = shalt.err (!%p1752_p9)
}
  0x2a   : > { %1590 = dma.hbm_to_vmem [thread:$0]  (!%p1987_p10), %s326_s28, 16, %s328_s27, %s318_s17  }
  0x2b   : > { %336 = sbr.rel (%p1951_p8) target bundleno = 2132 (0x854), region = 56  ;;  %s2004_s19 = sand.u32 (!%p1951_p8), 1, %s1833_s10  }
  0x2c   : > { %s339_s22 = scalar_lea.sflag (!%p1951_p8), [#allocation3], %s2004_s19  ;;  %s341_s24 = scalar_lea.vmem (!%p1951_p8), [#allocation2], %s2004_s19 }
  0x30   : > { %1816 = dma.done.wait (%p1938_p4), %s339_s22, 16  }
  0x31   : > { %1818 = vsyncadd (%p1938_p4), %s339_s22, 4294967280 }
  0x32   : > { %1820 = dma.done.wait (%p73_p1), [#allocation6], 384  }
  0x33   : > { %1822 = vsyncadd (%p73_p1), [#allocation6], 4294966912  ;;  %p390_p8 = scmp.lt.s32.totalorder %s1929_s13, 1  ;;  %vm398_vm0 = vcmask 261120   ;;  %v1847_v2 = vmov 32.0   ;;  %v1559_v14 = vld [vmem:[%s2307_s5 + $0x8] sm:$0xff] }
  0x34   : > { %1657 = vrcp.f32 %v1847_v2  ;;  %462 = vmatpush.bf16.msra.mxu0 %v1559_v14  ;;  %v1558_v15 = vld [vmem:[%s2307_s5] sm:$0xff]  ;;  %s1848_s22 = smov 104   ;;  %s1851_s20 = smov 112   ;;  %v1853_v45 = vmov 1983009808   ;;  %vm501_vm5 = vcmask 1047556  }
  0x35   : > { %s391_s2 = scalar_select %p390_p8, %s1929_s13, 1  ;;  %v1648_v25 = vld [vmem:[#allocation5] ss:$0 sm:$0xff]  ;;  %v1649_v28 = vld [vmem:[#allocation5 + $0x1] ss:$0 sm:$0xff]  ;;  %v492_v46 = vunpack.c.l.s4 %v1853_v45  ;;  %vm849_vm6 = vcmask 64512  }
  0x36   : > { %v1650_v32 = vld [vmem:[%s2305_s3] ss:$0 sm:$0xff]  ;;  %s1852_s27 = smov 64   ;;  %v1854_v53 = vmov 1934713408   ;;  %vm977_vm7 = vcmask 1043456  }
  0x37   : > { %s1500_s7 = sshll.u32 %s391_s2, 3  ;;  %s1849_s2 = smov 120   ;;  %v2051_v51 = vunpack.c.0.s8 %v492_v46  ;;  %v506_v54 = vunpack.c.l.s4 %v1854_v53  ;;  %vm1175_vm8 = vcmask 130048   ;;  %vm1177_vm9 = vcmask 195584  }
  0x38   : > { %s393_s28 = scalar_lea.vmem %s2302_s0, %s1500_s7  ;;  %463 = vmatpush.bf16.msra.mxu0 %v1558_v15  ;;  %s1850_s7 = smov 96  }
  0x39   : > { %v2021_v0 = vld [vmem:[%s393_s28] sm:$0xff]  ;;  %v2055_v63 = vunpack.c.0.s8 %v506_v54  ;;  %s1856_s28 = smov 24   ;;  %s1857_s15 = smov 8  }
  0x3a   : > { %v399_v1 = vsel %vm398_vm0, %v2021_v0, 0.0  ;;  %v1658_v3 = vpop.eup %1657  ;;  %s1499_s17 = sshll.u32 %s2004_s19, 3  ;;  %s1555_s18 = sshll.u32 %s1929_s13, 3 }
  0x3b   : > { %400 = vadd.xlane.f32.xlu0 %v399_v1  ;;  %v403_v4 = vmul.f32 32.0, %v1658_v3  ;;  %vm407_vm1 = vweird.f32 %v1658_v3  ;;  %s1791_s29 = scalar_lea.hbm %s2311_s9, 16 }
  0x3d   : > { %v404_v5 = vsub.f32 1.0, %v403_v4 }
  0x3f   : > { %v405_v6 = vmul.f32 %v1658_v3, %v404_v5 }
  0x41   : > { %v406_v7 = vadd.f32 %v1658_v3, %v405_v6 }
  0x43   : > { %v2025_v8 = vsel %vm407_vm1, %v1658_v3, %v406_v7 }
  0xae   : > { %v401_v9 = vpop.xlane.xlu0 %400 }
  0xaf   : > { %v409_v10 = vmul.f32 %v2025_v8, %v401_v9 }
  0xb1   : > { %v410_v11 = vsub.f32 %v2021_v0, %v409_v10 }
  0xb3   : > { %v411_v12 = vmul.f32 %v410_v11, %v410_v11 }
  0xb5   : > { %v412_v13 = vsel %vm398_vm0, %v411_v12, 0.0 }
  0xb6   : > { %413 = vadd.xlane.f32.xlu0 %v412_v13 }
 0x129   : > { %v414_v16 = vpop.xlane.xlu0 %413 }
 0x12a   : > { %v415_v17 = vmul.f32 %v414_v16, %v2025_v8 }
 0x12c   : > { %v416_v18 = vadd.f32 1e-05, %v415_v17 }
 0x12e   : > { %1659 = vrsqrt.f32 %v416_v18  ;;  %vm423_vm3 = vweird.f32 %v416_v18 }
 0x134   : > { %v1660_v19 = vpop.eup %1659 }
 0x135   : > { %v418_v20 = vmul.f32 %v1660_v19, %v416_v18  ;;  %vm424_vm2 = vweird.f32 %v1660_v19 }
 0x136   : > { %vm425_vm4 = vmor %vm423_vm3, %vm424_vm2  ;;  %vm1359_vm2 = vcmask 523264  }
 0x137   : > { %v419_v21 = vmul.f32 %v1660_v19, %v418_v20 }
 0x139   : > { %v420_v22 = vmul.f32 0.5, %v419_v21 }
 0x13b   : > { %v421_v23 = vsub.f32 1.5, %v420_v22 }
 0x13d   : > { %v422_v24 = vmul.f32 %v1660_v19, %v421_v23 }
 0x13f   : > { %v426_v26 = vsel %vm425_vm4, %v1660_v19, %v422_v24 }
 0x140   : > { %v427_v27 = vmul.f32 %v426_v26, %v410_v11 }
 0x142   : > { %v429_v29 = vmul.f32 %v1648_v25, %v427_v27 }
 0x144   : > { %v431_v30 = vadd.f32 %v1649_v28, %v429_v29 }
 0x146   : > { %v432_v31 = vpack.c.bf16 %v431_v30, %v431_v30 }
 0x148   : > { %1509 = vmatmul.msk.bf16.vlgmr.msra.gmra.mxu0 %vm398_vm0, %v432_v31 }
 0x1c5   : > { %v465_v33 = vpop.f32.mrf.mxu0 }
 0x1c6   : > { %v466_v34 = vadd.f32 %v1650_v32, %v465_v33 }
 0x1c8   : > { %v593_v35 = vpack.c.bf16 %v466_v34, %v466_v34  ;;  %v469_v37 = vmul.f32 0.35355338, %v466_v34 }
 0x1ca   : > { %599 = vrot.lane.b32.xlu2 %v593_v35, %s1848_s22  ;;  %595 = vrot.lane.b32.xlu1 %v593_v35, %s1849_s2  ;;  %v470_v38 = vpack.c.bf16 %v469_v37, %v469_v37 }
 0x1cc   : > { %v481_v62 = vshrl.u32 %v470_v38, 16 }
 0x1cd   : > { %v467_v36 = vpop.f32.mrf.mxu0 }
 0x1d2   : > { %601 = vrot.lane.b32.xlu2 %v593_v35, %s1850_s7  ;;  %597 = vrot.lane.b32.xlu1 %v593_v35, %s1851_s20 }
 0x1da   : > { %472 = vrot.lane.b32.xlu1 %v470_v38, %s1849_s2  ;;  %s389_s2 = scalar_lea.vmem [#allocation8], %s1499_s17 }
 0x224   : > { %v2041_v39 = vpop.permute.xlu2 %599 }
 0x225   : > { %607 = vrot.lane.b32.xlu2 %v2041_v39, %s1850_s7 }
 0x22c   : > { %v602_v42 = vpop.permute.xlu2 %601 }
 0x22d   : > { %474 = vrot.lane.b32.xlu2 %v470_v38, %s1851_s20  ;;  %v612_v48 = vshrl.u32 %v602_v42, 16 }
 0x23c   : > { %v2044_v40 = vpop.permute.xlu1 %595 }
 0x23d   : > { %603 = vrot.lane.b32.xlu0 %v2044_v40, %s1850_s7 }
 0x244   : > { %v2047_v41 = vpop.permute.xlu1 %597 }
 0x245   : > { %723 = vrot.lane.b32.xlu0 %v593_v35, %s1852_s27  ;;  %605 = vrot.lane.b32.xlu1 %v2047_v41, %s1850_s7  ;;  %s1391_s7 = sshll.u32 %s389_s2, 4  ;;  %s1392_s7 = int_to_ptr.vmem [resolvable:$true] %s1391_s7 }
 0x24c   : > { %v473_v43 = vpop.permute.xlu1 %472 }
 0x24d   : > { %476 = vrot.lane.b32.xlu1 %v470_v38, %s1848_s22  ;;  %v482_v56 = vshrl.u32 %v473_v43, 16  ;;  %v480_v1 = vpack.i.b16 %v473_v43, %v470_v38  ;;  %s1389_s22 = scalar_lea.hbm %s2311_s9, %s1555_s18 }
 0x24e   : > { %s1393_s20 = sshll.u32 %s1389_s22, 4  ;;  %s1394_s20 = int_to_ptr.hbm [resolvable:$true] %s1393_s20 }
 0x24f   : > { %v483_v5 = vpack.i.b16 %v482_v56, %v481_v62  ;;  %v494_v13 = vperm.slane %v480_v1, %v2051_v51 }
 0x251   : > { %v521_v17 = vperm.slane %v483_v5, %v2051_v51  ;;  %v503_v30 = vrot.slane %v494_v13, 4 }
 0x253   : > { %v529_v34 = vrot.slane %v521_v17, 4 }
 0x27f   : > { %v608_v50 = vpop.permute.xlu2 %607 }
 0x280   : > { %v619_v58 = vshrl.u32 %v608_v50, 16 }
 0x287   : > { %v475_v11 = vpop.permute.xlu2 %474 }
 0x288   : > { %v487_v22 = vshrl.u32 %v475_v11, 16 }
 0x2af   : > { %v604_v44 = vpop.permute.xlu0 %603 }
 0x2b0   : > { %v613_v47 = vshrl.u32 %v604_v44, 16  ;;  %v611_v49 = vpack.i.b16 %v604_v44, %v602_v42 }
 0x2b2   : > { %v614_v52 = vpack.i.b16 %v613_v47, %v612_v48  ;;  %v625_v55 = vperm.slane %v611_v49, %v2051_v51 }
 0x2b4   : > { %v651_v59 = vperm.slane %v614_v52, %v2051_v51  ;;  %v633_v2 = vrot.slane %v625_v55, 4 }
 0x2b6   : > { %v659_v6 = vrot.slane %v651_v59, 4 }
 0x2b7   : > { %v606_v57 = vpop.permute.xlu1 %605 }
 0x2b8   : > { %v617_v60 = vpack.i.b16 %v608_v50, %v606_v57  ;;  %v618_v61 = vshrl.u32 %v606_v57, 16 }
 0x2ba   : > { %v620_v3 = vpack.i.b16 %v619_v58, %v618_v61  ;;  %v630_v4 = vperm.slane %v617_v60, %v2051_v51 }
 0x2bc   : > { %v631_v7 = vrot.slane %v630_v4, 4  ;;  %v634_v9 = vsel %vm501_vm5, %v630_v4, %v633_v2  ;;  %v656_v10 = vperm.slane %v620_v3, %v2051_v51 }
 0x2bd   : > { %v642_v12 = vperm.slane %v634_v9, %v2055_v63 }
 0x2be   : > { %v632_v14 = vsel %vm501_vm5, %v631_v7, %v625_v55  ;;  %v657_v15 = vrot.slane %v656_v10, 4  ;;  %v660_v16 = vsel %vm501_vm5, %v656_v10, %v659_v6 }
 0x2bf   : > { %v638_v18 = vperm.slane %v632_v14, %v2055_v63  ;;  %v645_v19 = vrot.slane %v642_v12, 4  ;;  %v668_v20 = vperm.slane %v660_v16, %v2055_v63  ;;  %v477_v21 = vpop.permute.xlu1 %476 }
 0x2c0   : > { %v658_v23 = vsel %vm501_vm5, %v657_v15, %v651_v59  ;;  %v486_v24 = vpack.i.b16 %v477_v21, %v475_v11  ;;  %v488_v25 = vshrl.u32 %v477_v21, 16 }
 0x2c1   : > { %v643_v26 = vrot.slane %v638_v18, 4  ;;  %v646_v27 = vsel %vm501_vm5, 0, %v645_v19  ;;  %v664_v28 = vperm.slane %v658_v23, %v2055_v63  ;;  %v671_v29 = vrot.slane %v668_v20, 4 }
 0x2c2   : > { %v678_v31 = vrot.slane %v646_v27, 4  ;;  %v489_v32 = vpack.i.b16 %v488_v25, %v487_v22  ;;  %v499_v33 = vperm.slane %v486_v24, %v2051_v51  ;;  %v673_v47 = vsel %vm501_vm5, %v645_v19, %v638_v18 }
 0x2c3   : > { %v644_v35 = vsel %vm501_vm5, 0, %v643_v26  ;;  %v669_v36 = vrot.slane %v664_v28, 4  ;;  %v672_v37 = vsel %vm501_vm5, 0, %v671_v29  ;;  %v692_v57 = vsel %vm501_vm5, %v671_v29, %v664_v28 }
 0x2c4   : > { %v697_v38 = vrot.slane %v672_v37, 4  ;;  %v500_v42 = vrot.slane %v499_v33, 4  ;;  %v504_v43 = vsel %vm501_vm5, %v499_v33, %v503_v30  ;;  %v526_v44 = vperm.slane %v489_v32, %v2051_v51 }
 0x2c5   : > { %v512_v45 = vperm.slane %v504_v43, %v2055_v63  ;;  %v670_v46 = vsel %vm501_vm5, 0, %v669_v36  ;;  %v679_v48 = vsel %vm501_vm5, %v678_v31, %v644_v35  ;;  %v677_v59 = vperm.slane %v673_v47, %v2051_v51 }
 0x2c6   : > { %v502_v49 = vsel %vm501_vm5, %v500_v42, %v494_v13  ;;  %v527_v50 = vrot.slane %v526_v44, 4  ;;  %v530_v52 = vsel %vm501_vm5, %v526_v44, %v529_v34  ;;  %v683_v53 = vperm.slane %v679_v48, %v2051_v51 }
 0x2c7   : > { %v508_v54 = vperm.slane %v502_v49, %v2055_v63  ;;  %v515_v55 = vrot.slane %v512_v45, 4  ;;  %v538_v56 = vperm.slane %v530_v52, %v2055_v63  ;;  %v698_v61 = vsel %vm501_vm5, %v697_v38, %v670_v46 }
 0x2c8   : > { %v528_v58 = vsel %vm501_vm5, %v527_v50, %v521_v17  ;;  %v684_v60 = vrot.slane %v683_v53, 4  ;;  %v696_v6 = vperm.slane %v692_v57, %v2051_v51  ;;  %v702_v7 = vperm.slane %v698_v61, %v2051_v51 }
 0x2c9   : > { %v513_v62 = vrot.slane %v508_v54, 4  ;;  %v516_v1 = vsel %vm501_vm5, 0, %v515_v55  ;;  %v534_v2 = vperm.slane %v528_v58, %v2055_v63  ;;  %v541_v3 = vrot.slane %v538_v56, 4 }
 0x2ca   : > { %v548_v4 = vrot.slane %v516_v1, 4  ;;  %v685_v5 = vsel %vm501_vm5, %v684_v60, %v677_v59  ;;  %v543_v13 = vsel %vm501_vm5, %v515_v55, %v508_v54  ;;  %v703_v15 = vrot.slane %v702_v7, 4 }
 0x2cb   : > { %v514_v9 = vsel %vm501_vm5, 0, %v513_v62  ;;  %v539_v10 = vrot.slane %v534_v2, 4  ;;  %v542_v11 = vsel %vm501_vm5, 0, %v541_v3  ;;  %v689_v12 = vperm.slane %v685_v5, %v2055_v63 }
 0x2cc   : > { %v567_v14 = vrot.slane %v542_v11, 4  ;;  %v549_v16 = vsel %vm501_vm5, %v548_v4, %v514_v9  ;;  %v704_v20 = vsel %vm501_vm5, %v703_v15, %v696_v6  ;;  %v547_v23 = vperm.slane %v543_v13, %v2051_v51 }
 0x2cd   : > { %v540_v17 = vsel %vm501_vm5, 0, %v539_v10  ;;  %v690_v18 = vrot.slane %v689_v12, 4  ;;  %v553_v19 = vperm.slane %v549_v16, %v2051_v51  ;;  %v708_v22 = vperm.slane %v704_v20, %v2055_v63  ;;  %v724_v20 = vpop.permute.xlu0 %723 }
 0x2ce   : > { %v568_v21 = vsel %vm501_vm5, %v567_v14, %v540_v17  ;;  %v562_v25 = vsel %vm501_vm5, %v541_v3, %v534_v2  ;;  %v714_v26 = vshrl.u32 %v689_v12, 16  ;;  %v1651_v2 = vld [vmem:[%s341_s24] ss:$0 sm:$0xff]  ;;  %s1855_s24 = smov 16  }
 0x2cf   : > { %v554_v24 = vrot.slane %v553_v19, 4  ;;  %v691_v27 = vsel %vm501_vm5, 0, %v690_v18  ;;  %v572_v28 = vperm.slane %v568_v21, %v2051_v51  ;;  %v713_v29 = vpack.i.b16 %v708_v22, %v689_v12 }
 0x2d0   : > { %v715_v30 = vshrl.u32 %v708_v22, 16  ;;  %v709_v31 = vrot.slane %v708_v22, 4  ;;  %v566_v34 = vperm.slane %v562_v25, %v2051_v51  ;;  %v720_v43 = vshrl.u32 %v691_v27, 16 }
 0x2d1   : > { %v555_v32 = vsel %vm501_vm5, %v554_v24, %v547_v23  ;;  %v573_v35 = vrot.slane %v572_v28, 4  ;;  %v854_v36 = vsel %vm849_vm6, %v713_v29, 0 }
 0x2d2   : > { %v559_v33 = vperm.slane %v555_v32, %v2055_v63  ;;  %v716_v37 = vpack.i.b16 %v715_v30, %v714_v26  ;;  %v710_v38 = vsel %vm501_vm5, 0, %v709_v31  ;;  %863 = vmatpush.bf16.xpose.msra.mxu1 %v854_v36 }
 0x2d3   : > { %v719_v42 = vpack.i.b16 %v710_v38, %v691_v27  ;;  %v721_v44 = vshrl.u32 %v710_v38, 16  ;;  %v574_v45 = vsel %vm501_vm5, %v573_v35, %v566_v34  ;;  %v734_v35 = vshrl.u32 %v724_v20, 16 }
 0x2d4   : > { %v873_v46 = vsel %vm849_vm6, %v716_v37, 0  ;;  %v578_v47 = vperm.slane %v574_v45, %v2055_v63  ;;  %v560_v48 = vrot.slane %v559_v33, 4  ;;  %v584_v52 = vshrl.u32 %v559_v33, 16 }
 0x2d5   : > { %882 = vmatpush.bf16.xpose.msra.mxu2 %v873_v46  ;;  %v892_v49 = vsel %vm849_vm6, %v719_v42, 0  ;;  %v722_v50 = vpack.i.b16 %v721_v44, %v720_v43 }
 0x2d6   : > { %901 = vmatpush.bf16.xpose.msra.mxu3 %v892_v49  ;;  %v583_v53 = vpack.i.b16 %v578_v47, %v559_v33  ;;  %v585_v54 = vshrl.u32 %v578_v47, 16  ;;  %v561_v55 = vsel %vm501_vm5, 0, %v560_v48  ;;  %v579_v56 = vrot.slane %v578_v47, 4 }
 0x2d7   : > { %v911_v57 = vsel %vm849_vm6, %v722_v50, 0  ;;  %v590_v61 = vshrl.u32 %v561_v55, 16 }
 0x2d8   : > { %920 = vmatpush.bf16.xpose.msrb.mxu0 %v911_v57  ;;  %v586_v58 = vpack.i.b16 %v585_v54, %v584_v52  ;;  %v580_v59 = vsel %vm501_vm5, 0, %v579_v56 }
 0x2d9   : > { %v589_v60 = vpack.i.b16 %v580_v59, %v561_v55  ;;  %v591_v62 = vshrl.u32 %v580_v59, 16  ;;  %1510 = vmatmul.msk.bf16.vlgmr.msra.gmra.mxu1 %vm849_vm6, %v583_v53 }
 0x2db   : > { %v592_v1 = vpack.i.b16 %v591_v62, %v590_v61 }
 0x2dc   : > { %1511 = vmatmul.msk.bf16.vlgmr.msra.gmra.mxu2 %vm849_vm6, %v586_v58 }
 0x2dd   : > { %1512 = vmatmul.msk.bf16.vlgmr.msra.gmra.mxu3 %vm849_vm6, %v589_v60 }
 0x2df   : > { %1513 = vmatmul.msk.bf16.vlgmr.msrb.gmra.mxu0 %vm849_vm6, %v592_v1 }
 0x356   : > { %v865_v3 = vpop.f32.mrf.mxu1 }
 0x357   : > { %v866_v4 = vadd.f32 %v1651_v2, %v865_v3 }
 0x359   : > { %v926_v5 = vsel %vm849_vm6, %v866_v4, -inf }
 0x35a   : > { %927 = vmax.xlane.f32.xlu1 %v926_v5 }
 0x35c   : > { %v922_v6 = vpop.f32.mrf.mxu0 }
 0x35d   : > { %v923_v7 = vadd.f32 %v1651_v2, %v922_v6 }
 0x35e   : > { %v867_v9 = vpop.f32.mrf.mxu1 }
 0x35f   : > { %v884_v10 = vpop.f32.mrf.mxu2  ;;  %v935_v11 = vsel %vm849_vm6, %v923_v7, -inf }
 0x360   : > { %v885_v12 = vadd.f32 %v1651_v2, %v884_v10  ;;  %936 = vmax.xlane.f32.xlu2 %v935_v11  ;;  %v903_v13 = vpop.f32.mrf.mxu3 }
 0x361   : > { %v904_v15 = vadd.f32 %v1651_v2, %v903_v13 }
 0x362   : > { %v929_v14 = vsel %vm849_vm6, %v885_v12, -inf }
 0x363   : > { %930 = vmax.xlane.f32.xlu0 %v929_v14  ;;  %v932_v18 = vsel %vm849_vm6, %v904_v15, -inf }
 0x364   : > { %v924_v16 = vpop.f32.mrf.mxu0 }
 0x367   : > { %v886_v17 = vpop.f32.mrf.mxu2 }
 0x368   : > { %v905_v19 = vpop.f32.mrf.mxu3  ;;  %933 = vmax.xlane.f32.xlu2 %v932_v18 }
 0x373   : > { %727 = vrot.lane.b32.xlu1 %v2047_v41, %s1852_s27 }
 0x377   : > { %729 = vrot.lane.b32.xlu0 %v2041_v39, %s1852_s27 }
 0x380   : > { %725 = vrot.lane.b32.xlu2 %v2044_v40, %s1852_s27  ;;  %s1379_s27 = scalar_lea.sflag [#allocation4], %s2004_s19 }
 0x3cd   : > { %v928_v21 = vpop.xlane.xlu1 %927 }
 0x3ce   : > { %v938_v22 = vsub.f32 %v866_v4, %v928_v21 }
 0x3d0   : > { %v942_v23 = vmul.f32 1.442695, %v938_v22 }
 0x3d2   : > { %1661 = vpow2.f32 %v942_v23 }
 0x3d3   : > { %v937_v24 = vpop.xlane.xlu2 %936 }
 0x3d4   : > { %v941_v30 = vsub.f32 %v923_v7, %v937_v24 }
 0x3d6   : > { %v931_v25 = vpop.xlane.xlu0 %930  ;;  %v948_v32 = vmul.f32 1.442695, %v941_v30 }
 0x3d7   : > { %v939_v26 = vsub.f32 %v885_v12, %v931_v25 }
 0x3d8   : > { %v2135_v27 = vpop.eup %1661 }
 0x3d9   : > { %v944_v28 = vmul.f32 1.442695, %v939_v26  ;;  %v950_v41 = vsel %vm849_vm6, %v2135_v27, 0.0 }
 0x3da   : > { %951 = vadd.xlane.f32.xlu1 %v950_v41 }
 0x3db   : > { %1663 = vpow2.f32 %v944_v28  ;;  %v934_v39 = vpop.xlane.xlu2 %933 }
 0x3dc   : > { %v940_v29 = vsub.f32 %v904_v15, %v934_v39 }
 0x3de   : > { %v946_v40 = vmul.f32 1.442695, %v940_v29 }
 0x3e0   : > { %1665 = vpow2.f32 %v946_v40 }
 0x3e1   : > { %v2139_v31 = vpop.eup %1663  ;;  %1667 = vpow2.f32 %v948_v32 }
 0x3e2   : > { %v953_v33 = vsel %vm849_vm6, %v2139_v31, 0.0 }
 0x3e3   : > { %954 = vadd.xlane.f32.xlu0 %v953_v33  ;;  %v726_v34 = vpop.permute.xlu2 %725 }
 0x3e4   : > { %v733_v36 = vpack.i.b16 %v726_v34, %v724_v20  ;;  %v735_v37 = vshrl.u32 %v726_v34, 16 }
 0x3e5   : > { %v728_v43 = vpop.permute.xlu1 %727 }
 0x3e6   : > { %v2143_v38 = vpop.eup %1665  ;;  %v736_v42 = vpack.i.b16 %v735_v37, %v734_v35  ;;  %v747_v45 = vperm.slane %v733_v36, %v2051_v51  ;;  %v740_v48 = vshrl.u32 %v728_v43, 16 }
 0x3e7   : > { %v956_v44 = vsel %vm849_vm6, %v2143_v38, 0.0  ;;  %v2149_v52 = vpop.eup %1667 }
 0x3e8   : > { %957 = vadd.xlane.f32.xlu2 %v956_v44  ;;  %v773_v47 = vperm.slane %v736_v42, %v2051_v51  ;;  %v755_v53 = vrot.slane %v747_v45, 4  ;;  %v959_v61 = vsel %vm849_vm6, %v2149_v52, 0.0 }
 0x3e9   : > { %v730_v46 = vpop.permute.xlu0 %729 }
 0x3ea   : > { %v739_v49 = vpack.i.b16 %v730_v46, %v728_v43  ;;  %v741_v50 = vshrl.u32 %v730_v46, 16  ;;  %v781_v56 = vrot.slane %v773_v47, 4 }
 0x3ec   : > { %v742_v54 = vpack.i.b16 %v741_v50, %v740_v48  ;;  %v752_v55 = vperm.slane %v739_v49, %v2051_v51 }
 0x3ee   : > { %v753_v57 = vrot.slane %v752_v55, 4  ;;  %v756_v58 = vsel %vm501_vm5, %v752_v55, %v755_v53  ;;  %v778_v59 = vperm.slane %v742_v54, %v2051_v51 }
 0x3ef   : > { %v764_v60 = vperm.slane %v756_v58, %v2055_v63 }
 0x3f0   : > { %v754_v62 = vsel %vm501_vm5, %v753_v57, %v747_v45  ;;  %v779_v1 = vrot.slane %v778_v59, 4  ;;  %v782_v2 = vsel %vm501_vm5, %v778_v59, %v781_v56  ;;  %960 = vadd.xlane.f32.xlu2 %v959_v61 }
 0x3f1   : > { %v760_v3 = vperm.slane %v754_v62, %v2055_v63  ;;  %v767_v4 = vrot.slane %v764_v60, 4  ;;  %v790_v5 = vperm.slane %v782_v2, %v2055_v63 }
 0x3f2   : > { %v780_v6 = vsel %vm501_vm5, %v779_v1, %v773_v47 }
 0x3f3   : > { %v765_v7 = vrot.slane %v760_v3, 4  ;;  %v768_v9 = vsel %vm501_vm5, 0, %v767_v4  ;;  %v786_v10 = vperm.slane %v780_v6, %v2055_v63  ;;  %v793_v11 = vrot.slane %v790_v5, 4 }
 0x3f4   : > { %v800_v12 = vrot.slane %v768_v9, 4  ;;  %v795_v17 = vsel %vm501_vm5, %v767_v4, %v760_v3 }
 0x3f5   : > { %v766_v13 = vsel %vm501_vm5, 0, %v765_v7  ;;  %v791_v14 = vrot.slane %v786_v10, 4  ;;  %v794_v15 = vsel %vm501_vm5, 0, %v793_v11  ;;  %v814_v21 = vsel %vm501_vm5, %v793_v11, %v786_v10 }
 0x3f6   : > { %v819_v16 = vrot.slane %v794_v15, 4  ;;  %v801_v18 = vsel %vm501_vm5, %v800_v12, %v766_v13  ;;  %v799_v23 = vperm.slane %v795_v17, %v2051_v51  ;;  %v818_v28 = vperm.slane %v814_v21, %v2051_v51 }
 0x3f7   : > { %v792_v19 = vsel %vm501_vm5, 0, %v791_v14  ;;  %v805_v20 = vperm.slane %v801_v18, %v2051_v51 }
 0x3f8   : > { %v820_v22 = vsel %vm501_vm5, %v819_v16, %v792_v19 }
 0x3f9   : > { %v806_v24 = vrot.slane %v805_v20, 4  ;;  %v824_v25 = vperm.slane %v820_v22, %v2051_v51 }
 0x3fb   : > { %v807_v26 = vsel %vm501_vm5, %v806_v24, %v799_v23  ;;  %v825_v41 = vrot.slane %v824_v25, 4 }
 0x3fc   : > { %v811_v39 = vperm.slane %v807_v26, %v2055_v63 }
 0x3fd   : > { %v826_v29 = vsel %vm501_vm5, %v825_v41, %v818_v28 }
 0x3fe   : > { %v830_v30 = vperm.slane %v826_v29, %v2055_v63  ;;  %v812_v40 = vrot.slane %v811_v39, 4  ;;  %v836_v32 = vshrl.u32 %v811_v39, 16 }
 0x400   : > { %v835_v33 = vpack.i.b16 %v830_v30, %v811_v39  ;;  %v837_v34 = vshrl.u32 %v830_v30, 16  ;;  %v813_v35 = vsel %vm501_vm5, 0, %v812_v40  ;;  %v831_v36 = vrot.slane %v830_v30, 4 }
 0x401   : > { %v842_v45 = vshrl.u32 %v813_v35, 16 }
 0x402   : > { %v979_v37 = vsel %vm977_vm7, %v835_v33, 0  ;;  %v838_v42 = vpack.i.b16 %v837_v34, %v836_v32  ;;  %v832_v43 = vsel %vm501_vm5, 0, %v831_v36 }
 0x403   : > { %988 = vmatpush.bf16.msrb.mxu1 %v979_v37  ;;  %v841_v44 = vpack.i.b16 %v832_v43, %v813_v35  ;;  %v843_v46 = vshrl.u32 %v832_v43, 16 }
 0x404   : > { %v998_v47 = vsel %vm977_vm7, %v838_v42, 0 }
 0x405   : > { %1007 = vmatpush.bf16.msrb.mxu2 %v998_v47  ;;  %v1017_v48 = vsel %vm977_vm7, %v841_v44, 0  ;;  %v844_v49 = vpack.i.b16 %v843_v46, %v842_v45 }
 0x406   : > { %1026 = vmatpush.bf16.msrb.mxu3 %v1017_v48 }
 0x407   : > { %v1036_v50 = vsel %vm977_vm7, %v844_v49, 0 }
 0x408   : > { %1045 = vmatpush.bf16.msra.mxu0 %v1036_v50 }
 0x44d   : > { %v952_v53 = vpop.xlane.xlu1 %951 }
 0x44e   : > { %1669 = vrcp.f32 %v952_v53 }
 0x454   : > { %v1670_v54 = vpop.eup %1669 }
 0x455   : > { %v966_v55 = vmul.f32 %v1670_v54, %v2135_v27 }
 0x456   : > { %v955_v56 = vpop.xlane.xlu0 %954 }
 0x457   : > { %1671 = vrcp.f32 %v955_v56  ;;  %v970_v57 = vpack.c.bf16 %v966_v55, %v966_v55 }
 0x459   : > { %1514 = vmatmul.msk.bf16.vlgmr.msrb.gmra.mxu1 %vm849_vm6, %v970_v57 }
 0x45b   : > { %v958_v58 = vpop.xlane.xlu2 %957 }
 0x45c   : > { %1673 = vrcp.f32 %v958_v58 }
 0x45d   : > { %v1672_v59 = vpop.eup %1671 }
 0x45e   : > { %v967_v60 = vmul.f32 %v1672_v59, %v2139_v31 }
 0x460   : > { %v971_v61 = vpack.c.bf16 %v967_v60, %v967_v60 }
 0x462   : > { %v1674_v62 = vpop.eup %1673  ;;  %1515 = vmatmul.msk.bf16.vlgmr.msrb.gmra.mxu2 %vm849_vm6, %v971_v61 }
 0x463   : > { %v968_v1 = vmul.f32 %v1674_v62, %v2143_v38  ;;  %v961_v2 = vpop.xlane.xlu2 %960 }
 0x464   : > { %1675 = vrcp.f32 %v961_v2 }
 0x465   : > { %v972_v3 = vpack.c.bf16 %v968_v1, %v968_v1 }
 0x467   : > { %1516 = vmatmul.msk.bf16.vlgmr.msrb.gmra.mxu3 %vm849_vm6, %v972_v3 }
 0x46a   : > { %v1676_v27 = vpop.eup %1675 }
 0x46b   : > { %v969_v4 = vmul.f32 %v1676_v27, %v2149_v52 }
 0x46d   : > { %v973_v5 = vpack.c.bf16 %v969_v4, %v969_v4 }
 0x46f   : > { %1517 = vmatmul.msk.bf16.vlgmr.msra.gmra.mxu0 %vm849_vm6, %v973_v5 }
 0x4d6   : > { %v990_v6 = vpop.f32.mrf.mxu1 }
 0x4d7   : > { %v1054_v9 = vrot.slane %v990_v6, 4 }
 0x4de   : > { %v992_v7 = vpop.f32.mrf.mxu1 }
 0x4e5   : > { %v1009_v31 = vpop.f32.mrf.mxu2 }
 0x4e6   : > { %v1066_v11 = vrot.slane %v1009_v31, 4 }
 0x4ea   : > { %v1028_v10 = vpop.f32.mrf.mxu3 }
 0x4eb   : > { %v1051_v12 = vrot.slane %v1028_v10, 4  ;;  %v1055_v38 = vsel %vm501_vm5, %v1028_v10, %v1054_v9 }
 0x4ec   : > { %v1063_v13 = vperm.slane %v1055_v38, %v2051_v51  ;;  %v1047_v14 = vpop.f32.mrf.mxu0 }
 0x4ed   : > { %v1053_v15 = vsel %vm501_vm5, %v1051_v12, %v990_v6  ;;  %v1064_v16 = vrot.slane %v1047_v14, 4  ;;  %v1067_v52 = vsel %vm501_vm5, %v1047_v14, %v1066_v11  ;;  %v1011_v17 = vpop.f32.mrf.mxu2  ;;  %v1561_v14 = vld [vmem:[%s2308_s6 + $0x8] sm:$0xff] }
 0x4ee   : > { %v1059_v18 = vperm.slane %v1053_v15, %v2051_v51  ;;  %v1090_v19 = vrot.slane %v1063_v13, 4  ;;  %v1075_v20 = vperm.slane %v1067_v52, %v2051_v51  ;;  %1207 = vmatpush.bf16.msra.mxu1 %v1561_v14 }
 0x4ef   : > { %v1065_v21 = vsel %vm501_vm5, %v1064_v16, %v1009_v31 }
 0x4f0   : > { %v1078_v22 = vrot.slane %v1059_v18, 4  ;;  %v1071_v23 = vperm.slane %v1065_v21, %v2051_v51  ;;  %v1088_v24 = vrot.slane %v1075_v20, 4  ;;  %v1091_v25 = vsel %vm501_vm5, %v1075_v20, %v1090_v19  ;;  %v1652_v21 = vld [vmem:[#allocation5 + $0x2] ss:$0 sm:$0xff] }
 0x4f1   : > { %v1099_v26 = vperm.slane %v1091_v25, %v2055_v63 }
 0x4f2   : > { %v1076_v28 = vrot.slane %v1071_v23, 4  ;;  %v1079_v41 = vsel %vm501_vm5, %v1071_v23, %v1078_v22  ;;  %v1089_v39 = vsel %vm501_vm5, %v1088_v24, %v1063_v13  ;;  %v1030_v29 = vpop.f32.mrf.mxu3 }
 0x4f3   : > { %v1087_v30 = vperm.slane %v1079_v41, %v2055_v63  ;;  %v1095_v40 = vperm.slane %v1089_v39, %v2055_v63  ;;  %v1106_v32 = vrot.slane %v1099_v26, 4 }
 0x4f4   : > { %v1077_v33 = vsel %vm501_vm5, %v1076_v28, %v1059_v18  ;;  %v1049_v34 = vpop.f32.mrf.mxu0 }
 0x4f5   : > { %v1083_v35 = vperm.slane %v1077_v33, %v2055_v63  ;;  %v1102_v36 = vrot.slane %v1087_v30, 4  ;;  %v1104_v37 = vrot.slane %v1095_v40, 4  ;;  %v1107_v42 = vsel %vm501_vm5, 0.0, %v1106_v32 }
 0x4f6   : > { %v1119_v43 = vsel %vm501_vm5, %v1106_v32, %v1095_v40  ;;  %v1124_v44 = vrot.slane %v1107_v42, 4  ;;  %v1563_v40 = vld [vmem:[#allocation7 + $0x8] sm:$0xff]  ;;  %v1562_v32 = vld [vmem:[#allocation7] sm:$0xff] }
 0x4f7   : > { %v1100_v45 = vrot.slane %v1083_v35, 4  ;;  %v1103_v46 = vsel %vm501_vm5, 0.0, %v1102_v36  ;;  %v1105_v47 = vsel %vm501_vm5, 0.0, %v1104_v37  ;;  %v1123_v48 = vperm.slane %v1119_v43, %v2051_v51  ;;  %1273 = vmatpush.bf16.msra.mxu2 %v1563_v40 }
 0x4f8   : > { %v1113_v49 = vrot.slane %v1103_v46, 4  ;;  %v1108_v50 = vsel %vm501_vm5, %v1102_v36, %v1083_v35  ;;  %v1125_v53 = vsel %vm501_vm5, %v1124_v44, %v1105_v47 }
 0x4f9   : > { %v1101_v54 = vsel %vm501_vm5, 0.0, %v1100_v45  ;;  %v1112_v55 = vperm.slane %v1108_v50, %v2051_v51  ;;  %v1129_v56 = vperm.slane %v1125_v53, %v2051_v51  ;;  %v1144_v57 = vrot.slane %v1123_v48, 4  ;;  %v1653_v45 = vld [vmem:[#allocation5 + $0x3] ss:$0 sm:$0xff] }
 0x4fa   : > { %v1114_v58 = vsel %vm501_vm5, %v1113_v49, %v1101_v54 }
 0x4fb   : > { %v1118_v59 = vperm.slane %v1114_v58, %v2051_v51  ;;  %v1132_v60 = vrot.slane %v1112_v55, 4  ;;  %v1145_v61 = vsel %vm501_vm5, %v1129_v56, %v1144_v57  ;;  %v1142_v62 = vrot.slane %v1129_v56, 4  ;;  %1274 = vmatpush.bf16.msra.mxu2 %v1562_v32 }
 0x4fc   : > { %v1153_v1 = vperm.slane %v1145_v61, %v2055_v63 }
 0x4fd   : > { %v1133_v2 = vsel %vm501_vm5, %v1118_v59, %v1132_v60  ;;  %v1130_v3 = vrot.slane %v1118_v59, 4  ;;  %v1143_v27 = vsel %vm501_vm5, %v1142_v62, %v1123_v48  ;;  %v1654_v48 = vld [vmem:[#allocation5 + $0x4] ss:$0 sm:$0xff]  ;;  %v1567_v60 = vld [vmem:[%s2310_s8 + $0x18] sm:$0xff] }
 0x4fe   : > { %v1141_v4 = vperm.slane %v1133_v2, %v2055_v63  ;;  %v1158_v5 = vrot.slane %v1153_v1, 4  ;;  %v1149_v6 = vperm.slane %v1143_v27, %v2055_v63  ;;  %1367 = vmatpush.bf16.msra.mxu3 %v1567_v60 }
 0x4ff   : > { %v1131_v7 = vsel %vm501_vm5, %v1130_v3, %v1112_v55  ;;  %v1566_v3 = vld [vmem:[%s2310_s8 + $0x10] sm:$0xff] }
 0x500   : > { %v1159_v51 = vsel %vm501_vm5, %v1158_v5, %v1141_v4  ;;  %v1160_v31 = vrot.slane %v1141_v4, 4  ;;  %v1137_v9 = vperm.slane %v1131_v7, %v2055_v63  ;;  %v1154_v10 = vrot.slane %v1149_v6, 4  ;;  %v1560_v63 = vld [vmem:[%s2308_s6] sm:$0xff]  ;;  %v1565_v7 = vld [vmem:[%s2310_s8 + $0x8] sm:$0xff] }
 0x501   : > { %1167 = vrot.lane.b32.xlu1 %v1159_v51, %s1855_s24  ;;  %1208 = vmatpush.bf16.msra.mxu1 %v1560_v63  ;;  %s1785_s24 = sshra.s32 %s1394_s20, 4  ;;  %s1786_s24 = int_to_ptr.hbm [resolvable:$true] %s1785_s24 }
 0x502   : > { %v1161_v11 = vsel %vm501_vm5, %v1153_v1, %v1160_v31  ;;  %v1156_v12 = vrot.slane %v1137_v9, 4  ;;  %v1155_v38 = vsel %vm501_vm5, %v1154_v10, %v1137_v9  ;;  %1368 = vmatpush.bf16.msra.mxu3 %v1566_v3  ;;  %v1564_v10 = vld [vmem:[%s2310_s8] sm:$0xff]  ;;  %s1787_s13 = scalar_lea.hbm %s1786_s24, 8  ;;  %p1792_p10 = scmp.lt.s32.totalorder %s1786_s24, %s2311_s9 }
 0x503   : > { %1171 = vrot.lane.b32.xlu2 %v1161_v11, %s1856_s28  ;;  %p1788_p1 = scmp.ne.s32.totalorder %s1786_s24, %s1787_s13  ;;  %p1793_p2 = scmp.lt.s32.totalorder %s1791_s29, %s1787_s13 }
 0x504   : > { %v1157_v13 = vsel %vm501_vm5, %v1149_v6, %v1156_v12 }
 0x505   : > { %1163 = vrot.lane.b32.xlu0 %v1157_v13, %s1857_s15  ;;  %p1789_p4 = pnand %p1788_p1, %p1977_p5  ;;  %p1794_p11 = por %p1793_p2, %p1792_p10 }
 0x506   : > { %1369 = vmatpush.bf16.msra.mxu3 %v1565_v7 }
 0x507   : > { %p1790_p9 = pneg %p1789_p4 }
 0x509   : > { %p1795_p12 = pnand %p1794_p11, %p1790_p9 }
 0x50a   : > { %1370 = vmatpush.bf16.msra.mxu3 %v1564_v10 }
 0x55d   : > { %v1172_v17 = vpop.permute.xlu2 %1171 }
 0x573   : > { %v1168_v16 = vpop.permute.xlu1 %1167 }
 0x577   : > { %v1164_v15 = vpop.permute.xlu0 %1163 }
 0x578   : > { %v1174_v52 = vsel %vm849_vm6, %v1155_v38, %v1164_v15 }
 0x579   : > { %v1176_v18 = vsel %vm1175_vm8, %v1174_v52, %v1168_v16 }
 0x57a   : > { %v1178_v19 = vsel %vm1177_vm9, %v1176_v18, %v1172_v17 }
 0x57b   : > { %v1179_v20 = vpack.c.bf16 %v1178_v19, %v1178_v19 }
 0x57d   : > { %1526 = vmatmul.msk.bf16.vlgmr.msra.gmra.mxu1 %vm398_vm0, %v1179_v20 }
 0x5fa   : > { %v1210_v22 = vpop.f32.mrf.mxu1 }
 0x5fb   : > { %v1211_v23 = vadd.f32 %v1652_v21, %v1210_v22 }
 0x5fd   : > { %v2242_v24 = vadd.f32 %v1211_v23, %v2021_v0 }
 0x5ff   : > { %v1217_v25 = vsel %vm398_vm0, %v2242_v24, 0.0 }
 0x600   : > { %1218 = vadd.xlane.f32.xlu0 %v1217_v25 }
 0x602   : > { %v1212_v26 = vpop.f32.mrf.mxu1 }
 0x673   : > { %v1219_v28 = vpop.xlane.xlu0 %1218 }
 0x674   : > { %v1220_v41 = vmul.f32 %v1219_v28, %v2025_v8 }
 0x676   : > { %v1221_v39 = vsub.f32 %v2242_v24, %v1220_v41 }
 0x678   : > { %v1222_v29 = vmul.f32 %v1221_v39, %v1221_v39 }
 0x67a   : > { %v1223_v30 = vsel %vm398_vm0, %v1222_v29, 0.0 }
 0x67b   : > { %1224 = vadd.xlane.f32.xlu1 %v1223_v30 }
 0x6ee   : > { %v1225_v0 = vpop.xlane.xlu1 %1224 }
 0x6ef   : > { %v1226_v33 = vmul.f32 %v1225_v0, %v2025_v8  ;;  %v1655_v8 = vld [vmem:[%s2306_s4] ss:$0 sm:$0xff] }
 0x6f1   : > { %v1227_v34 = vadd.f32 1e-05, %v1226_v33  ;;  %v1656_v33 = vld [vmem:[#allocation5 + $0x5] ss:$0 sm:$0xff] }
 0x6f3   : > { %1677 = vrsqrt.f32 %v1227_v34  ;;  %vm1234_vm11 = vweird.f32 %v1227_v34 }
 0x6f9   : > { %v1678_v35 = vpop.eup %1677 }
 0x6fa   : > { %v1229_v36 = vmul.f32 %v1678_v35, %v1227_v34  ;;  %vm1235_vm10 = vweird.f32 %v1678_v35 }
 0x6fb   : > { %vm1236_vm12 = vmor %vm1234_vm11, %vm1235_vm10 }
 0x6fc   : > { %v1230_v37 = vmul.f32 %v1678_v35, %v1229_v36 }
 0x6fe   : > { %v1231_v42 = vmul.f32 0.5, %v1230_v37 }
 0x700   : > { %v1232_v43 = vsub.f32 1.5, %v1231_v42 }
 0x702   : > { %v1233_v44 = vmul.f32 %v1678_v35, %v1232_v43 }
 0x704   : > { %v1237_v46 = vsel %vm1236_vm12, %v1678_v35, %v1233_v44 }
 0x705   : > { %v1238_v47 = vmul.f32 %v1237_v46, %v1221_v39 }
 0x707   : > { %v1240_v49 = vmul.f32 %v1653_v45, %v1238_v47 }
 0x709   : > { %v1242_v50 = vadd.f32 %v1654_v48, %v1240_v49 }
 0x70b   : > { %v1243_v53 = vpack.c.bf16 %v1242_v50, %v1242_v50 }
 0x70d   : > { %1535 = vmatmul.msk.bf16.vlgmr.msra.gmra.mxu2 %vm398_vm0, %v1243_v53 }
 0x790   : > { %v1276_v54 = vpop.f32.mrf.mxu2 }
 0x791   : > { %v1277_v55 = vadd.f32 %v1655_v8, %v1276_v54 }
 0x793   : > { %v1281_v56 = vmul.f32 0.70710677, %v1277_v55  ;;  %v1280_v30 = vmul.f32 0.5, %v1277_v55 }
 0x795   : > { %v1282_v57 = vmul.f32 %v1281_v56, %v1281_v56 }
 0x797   : > { %v1283_v58 = vmin.f32 %v1282_v57, 16.0 }
 0x798   : > { %v1278_v59 = vpop.f32.mrf.mxu2 }
 0x799   : > { %v1284_v61 = vmul.f32 2.1237322e-06, %v1283_v58  ;;  %v1295_v62 = vmul.f32 3.8918573e-05, %v1283_v58 }
 0x79b   : > { %v1285_v1 = vadd.f32 0.00028619796, %v1284_v61  ;;  %v1296_v2 = vadd.f32 0.001143296, %v1295_v62 }
 0x79d   : > { %v1286_v27 = vmul.f32 %v1285_v1, %v1283_v58  ;;  %v1297_v4 = vmul.f32 %v1296_v2, %v1283_v58 }
 0x79f   : > { %v1298_v5 = vadd.f32 0.014752088, %v1297_v4  ;;  %v1287_v6 = vadd.f32 0.0036580483, %v1286_v27 }
 0x7a1   : > { %v1299_v51 = vmul.f32 %v1298_v5, %v1283_v58  ;;  %v1288_v9 = vmul.f32 %v1287_v6, %v1283_v58 }
 0x7a3   : > { %v1300_v31 = vadd.f32 0.112945676, %v1299_v51  ;;  %v1289_v38 = vadd.f32 0.05243302, %v1288_v9 }
 0x7a5   : > { %v1301_v11 = vmul.f32 %v1300_v31, %v1283_v58  ;;  %v1290_v63 = vmul.f32 %v1289_v38, %v1283_v58 }
 0x7a7   : > { %v1302_v12 = vadd.f32 0.4994258, %v1301_v11  ;;  %v1291_v15 = vadd.f32 0.18741608, %v1290_v63 }
 0x7a9   : > { %v1303_v13 = vmul.f32 %v1302_v12, %v1283_v58  ;;  %v1292_v52 = vmul.f32 %v1291_v15, %v1283_v58 }
 0x7ab   : > { %v1304_v14 = vadd.f32 1.0, %v1303_v13  ;;  %v1293_v20 = vadd.f32 1.1283791, %v1292_v52 }
 0x7ad   : > { %1679 = vrcp.f32 %v1304_v14  ;;  %v1316_v19 = vand.u32 2147483648, %v1304_v14  ;;  %v1314_v22 = vand.u32 2147483647, %v1304_v14  ;;  %vm1310_vm14 = vweird.f32 %v1304_v14 }
 0x7ae   : > { %v1294_v26 = vmul.f32 %v1293_v20, %v1281_v56 }
 0x7af   : > { %v1317_v25 = vor.u32 1.1754944e-38, %v1316_v19  ;;  %vm1315_vm1 = vcmp.eq.f32.partialorder %v1314_v22, 8.507059e+37 }
 0x7b3   : > { %v1680_v16 = vpop.eup %1679 }
 0x7b4   : > { %v1306_v17 = vmul.f32 %v1680_v16, %v1304_v14  ;;  %vm1311_vm13 = vweird.f32 %v1680_v16 }
 0x7b5   : > { %vm1312_vm15 = vmor %vm1310_vm14, %vm1311_vm13 }
 0x7b6   : > { %v1307_v18 = vsub.f32 1.0, %v1306_v17 }
 0x7b8   : > { %v1308_v21 = vmul.f32 %v1680_v16, %v1307_v18 }
 0x7ba   : > { %v1309_v23 = vadd.f32 %v1680_v16, %v1308_v21 }
 0x7bc   : > { %v1313_v28 = vsel %vm1312_vm15, %v1680_v16, %v1309_v23 }
 0x7bd   : > { %v1318_v41 = vsel %vm1315_vm1, %v1317_v25, %v1313_v28 }
 0x7be   : > { %v1319_v39 = vmul.f32 %v1318_v41, %v1294_v26 }
 0x7c0   : > { %v1536_v29 = vclamps-f32 %v1319_v39, 1.0 }
 0x7c2   : > { %v1322_v40 = vadd.f32 1.0, %v1536_v29 }
 0x7c4   : > { %v1323_v32 = vmul.f32 %v1322_v40, %v1280_v30 }
 0x7c6   : > { %v1324_v0 = vpack.c.bf16 %v1323_v32, %v1323_v32 }
 0x7c8   : > { %1553 = vmatmul.msk.bf16.vlgmr.msra.gmra.mxu3 %vm1359_vm2, %v1324_v0 }
 0x84b   : > { %v1372_v34 = vpop.f32.mrf.mxu3 }
 0x84c   : > { %v1373_v35 = vadd.f32 %v1656_v33, %v1372_v34 }
 0x84e   : > { %v1376_v36 = vadd.f32 %v1373_v35, %v2242_v24 }
 0x850   : > { %1377 = vst.msk [vmem:[%s389_s2] sm:$0xff] %vm398_vm0, %v1376_v36 }
 0x851   : > { %1798 = shalt.err (!%p1795_p12)
}
 0x852   : > { %1578 = dma.vmem_to_hbm [thread:$0]  (%p1977_p5), %s1392_s7, 128, %s1394_s20, %s1379_s27  }
 0x853   : > { %v1374_v24 = vpop.f32.mrf.mxu3 }
 0x854 PF: > { %s1405_s19 = sand.u32 1, %s1829_s30   ;;  %p2321_p13 = scmp.ge.s32.totalorder %s1841_s12, 2 }
 0x855   : > { %s1406_s25 = scalar_lea.sflag [#allocation4], %s1405_s19 }
 0x856   : > { %p1592_p0 = pnand %p2321_p13, %p1943_p6 }
 0x858   : > { %p1593_p3 = pneg %p1592_p0 }
 0x85a   : > { %1824 = dma.done.wait (%p1593_p3), %s1406_s25, 128  }
 0x85b   : > { %1826 = vsyncadd (%p1593_p3), %s1406_s25, 4294967168  ;;  %p23_p7 = scmp.ge.s32.totalorder %s1964_s14, 4   ;;  %s2322_s30 = smov %s1833_s10 }
 0x85c   : > { %s2323_s10 = smov %s1837_s11  ;;  %s2324_s11 = smov %s1973_s21 }
 0x85d   : > { %s2325_s12 = smov %s1964_s14  ;;  %25 = sbr.rel (!%p23_p7) target bundleno = 9 (0x9), region = 112 }
 0x862   :  { %1412 = vsyncpa [#allocation3], 1 }
 0x863   :  { %1414 = vsyncpa [#allocation3 + $0x1], 1 }
 0x864   :  { %1415 = vsyncpa [#allocation6], 1 }
 0x865   :  { %1416 = vsyncpa [#allocation4], 1 }
 0x866   :  { %1418 = vsyncpa [#allocation4 + $0x1], 1 }

</bundles_post_ra>
